<compile_context>
chip_gen: v6e
topology: v6e:2x2x1
jax: 0.10.0
libtpu: 0.0.40
codegen_flags: <defaults>
</compile_context>

<pallas_src>
import functools
import math

import jax
import jax.numpy as jnp
from jax.experimental import pallas as pl
from jax.experimental.pallas import tpu as pltpu

LANE = 128
SUBLANE = 8

# bf16 MXU inputs on all generations (f32 accumulation is kept).  Flip back to
# jnp.float32 for bit-level parity with the f32 PyTorch module.
MXU_INPUT_DTYPE = jnp.bfloat16


def _round_up(v, m):
    return (v + m - 1) // m * m


def _pad_to(a, shape):
    pads = [(0, t - s) for s, t in zip(a.shape, shape)]
    if any(p[1] for p in pads):
        a = jnp.pad(a, pads)
    return a


def fc_kernel(x_ref, w1_ref, w2_ref, w3_ref, vec_ref, o_ref):
    """Fused MLP forward: (Linear -> BatchNorm1d(train) -> ReLU) x2 -> Linear.

    vec_ref rows: 0=gamma1, 1=beta1, 2=gamma2, 3=beta2, 4=b3 (rest zero pad).
    Linear biases b1/b2 are omitted: training-mode BatchNorm subtracts the
    batch mean, so a per-feature additive bias cancels exactly.
    NOTE: assumes the batch dimension is NOT padded (stats use all rows).
    """
    eps = jnp.float32(1e-5)
    n = x_ref.shape[0]
    inv_n = jnp.float32(1.0 / n)
    # Column-sum operator: route the axis-0 batch reductions through the MXU
    # (idle between the layer matmuls) instead of burning VALU/XLU bundles.
    ones_row = jnp.ones((1, n), jnp.float32)

    def linear_bn_relu(h, w_ref, gamma, beta):
        # Linear WITHOUT bias (cancels under the batch-mean subtraction).
        z = jnp.dot(h.astype(w_ref.dtype), w_ref[...],
                    preferred_element_type=jnp.float32)
        # One-pass biased batch statistics via MXU column sums.
        s1 = jnp.dot(ones_row, z, preferred_element_type=jnp.float32)
        s2 = jnp.dot(ones_row, z * z, preferred_element_type=jnp.float32)
        mean = s1 * inv_n
        # Clamp: E[z^2] - E[z]^2 can go slightly negative under cancellation.
        var = jnp.maximum(s2 * inv_n - mean * mean, 0.0)
        # Fold BN normalize + affine into a single scale/shift.
        scale = gamma * jax.lax.rsqrt(var + eps)
        shift = beta - mean * scale
        return jnp.maximum(z * scale + shift, 0.0)

    h1w = w1_ref.shape[1]
    h2w = w2_ref.shape[1]
    ow = w3_ref.shape[1]

    x = x_ref[...]
    h1 = linear_bn_relu(x, w1_ref, vec_ref[0:1, :h1w], vec_ref[1:2, :h1w])
    h2 = linear_bn_relu(h1, w2_ref, vec_ref[2:3, :h2w], vec_ref[3:4, :h2w])
    out = jnp.dot(h2.astype(w3_ref.dtype), w3_ref[...],
                  preferred_element_type=jnp.float32) + vec_ref[4:5, :ow]
    o_ref[...] = out.astype(o_ref.dtype)


def prepare_params(params):
    """One-time (init-time) padding / casting / packing of the kernel operands.

    Hoisted out of the per-call path so the forward does no weight-side XLA ops.
      * weights: cast to MXU_INPUT_DTYPE; in_dim padded to a sublane multiple
        (contraction-only), hidden/out dims padded to 128 lanes (store dims).
      * all per-feature vectors packed into a single (8, max_width) f32 array.
    Padded gamma entries are 0, so padded hidden lanes stay exactly 0 after BN.
    """
    in_dim, h1 = params["w1"].shape
    h2 = params["w2"].shape[1]
    out_dim = params["w3"].shape[1]

    in_p = _round_up(in_dim, SUBLANE)     # contraction-only: sublane pad suffices
    h1_p = _round_up(h1, LANE)
    h2_p = _round_up(h2, LANE)
    out_p = _round_up(out_dim, LANE)
    vec_w = max(h1_p, h2_p, out_p)

    w1_p = _pad_to(params["w1"], (in_p, h1_p)).astype(MXU_INPUT_DTYPE)
    w2_p = _pad_to(params["w2"], (h1_p, h2_p)).astype(MXU_INPUT_DTYPE)
    w3_p = _pad_to(params["w3"], (h2_p, out_p)).astype(MXU_INPUT_DTYPE)

    vecs = jnp.zeros((SUBLANE, vec_w), jnp.float32)
    vecs = vecs.at[0, :h1].set(params["g1"].reshape(-1))
    vecs = vecs.at[1, :h1].set(params["bt1"].reshape(-1))
    vecs = vecs.at[2, :h2].set(params["g2"].reshape(-1))
    vecs = vecs.at[3, :h2].set(params["bt2"].reshape(-1))
    vecs = vecs.at[4, :out_dim].set(params["b3"].reshape(-1))

    return dict(w1=w1_p, w2=w2_p, w3=w3_p, vecs=vecs)


@functools.partial(jax.jit, static_argnames=("out_dim",))
def fc_forward(x, w1_p, w2_p, w3_p, vecs, *, out_dim):
    """Hot-path forward: pad+cast x, run the fused kernel once, slice back."""
    n = x.shape[0]
    in_p = w1_p.shape[0]
    out_p = w3_p.shape[1]

    x_p = _pad_to(x, (n, in_p)).astype(MXU_INPUT_DTYPE)

    vmem = pl.BlockSpec(memory_space=pltpu.MemorySpace.VMEM)
    out_padded = pl.pallas_call(
        fc_kernel,
        out_shape=jax.ShapeDtypeStruct((n, out_p), jnp.float32),
        in_specs=[vmem] * 5,
        out_specs=vmem,
        compiler_params=pltpu.CompilerParams(
            vmem_limit_bytes=32 * 1024 * 1024),  # v5e default is only 16 MiB
    )(x_p, w1_p, w2_p, w3_p, vecs)
    return out_padded[:, :out_dim]


def init_params(key, in_dim, h1, h2, out_dim):
    """PyTorch-default-style init (uniform +/- 1/sqrt(fan_in)); BN gamma=1, beta=0."""
    ks = jax.random.split(key, 6)

    def linear_init(kw, kb, fan_in, fan_out):
        bound = 1.0 / math.sqrt(fan_in)
        w = jax.random.uniform(kw, (fan_in, fan_out), jnp.float32, -bound, bound)
        b = jax.random.uniform(kb, (1, fan_out), jnp.float32, -bound, bound)
        return w, b

    w1, b1 = linear_init(ks[0], ks[1], in_dim, h1)
    w2, b2 = linear_init(ks[2], ks[3], h1, h2)
    w3, b3 = linear_init(ks[4], ks[5], h2, out_dim)
    return dict(
        w1=w1, b1=b1, g1=jnp.ones((1, h1), jnp.float32), bt1=jnp.zeros((1, h1), jnp.float32),
        w2=w2, b2=b2, g2=jnp.ones((1, h2), jnp.float32), bt2=jnp.zeros((1, h2), jnp.float32),
        w3=w3, b3=b3,
    )


def fc_reference(x, p, quant_dtype=None):
    """Pure-JAX reference with the ORIGINAL module semantics (incl. b1/b2 and
    two-pass variance).  If quant_dtype is set, matmul inputs are quantized the
    same way as the kernel (f32 accumulation), isolating the fusion algebra."""
    eps = 1e-5

    def mm(a, b):
        if quant_dtype is not None:
            a = a.astype(quant_dtype)
            b = b.astype(quant_dtype)
        return jnp.dot(a, b, preferred_element_type=jnp.float32)

    def block(h, w, b, g, bt):
        z = mm(h, w) + b
        mean = z.mean(axis=0, keepdims=True)
        var = ((z - mean) ** 2).mean(axis=0, keepdims=True)
        z = (z - mean) / jnp.sqrt(var + eps) * g + bt
        return jnp.maximum(z, 0.0)

    h = block(x, p["w1"], p["b1"], p["g1"], p["bt1"])
    h = block(h, p["w2"], p["b2"], p["g2"], p["bt2"])
    return mm(h, p["w3"]) + p["b3"]


if __name__ == "__main__":
    # fc(in_dim=4, n_hidden_1=32, n_hidden_2=32, out_dim=4); batch of 128 rows
    # (multiple of 8, fills a v5e MXU pass; BN stats are over the full batch
    # inside the single kernel call, so semantics match the PyTorch module).
    batch, in_dim, h1, h2, out_dim = 128, 4, 32, 32, 4

    key = jax.random.PRNGKey(0)
    kx, kp = jax.random.split(key)
    x = jax.random.normal(kx, (batch, in_dim), jnp.float32)
    params = init_params(kp, in_dim, h1, h2, out_dim)

    # One-time operand preparation (hoisted out of the per-call hot path).
    prep = prepare_params(params)
    prep = jax.tree_util.tree_map(jax.block_until_ready, prep)

    out = fc_forward(x, prep["w1"], prep["w2"], prep["w3"], prep["vecs"],
                     out_dim=out_dim)
    out = jax.block_until_ready(out)
    assert out.shape == (batch, out_dim)

    # Tight check vs a reference with the SAME MXU-input quantization:
    # validates the fusion algebra (bias cancellation, folded scale/shift,
    # one-pass stats, MXU-based reductions).
    ref_quant = fc_reference(x, params, quant_dtype=MXU_INPUT_DTYPE)
    assert jnp.allclose(out, ref_quant, atol=3e-2, rtol=3e-2), \
        "mismatch vs quantized-input reference"

    # Loose sanity check vs the exact f32 module semantics (bounds only the
    # bf16 input-quantization error of the MXU path).
    ref_exact = fc_reference(x, params, quant_dtype=None)
    tol = 1e-4 if MXU_INPUT_DTYPE == jnp.float32 else 2e-1
    assert jnp.allclose(out, ref_exact, atol=tol, rtol=tol), \
        "mismatch vs exact f32 reference"

    print("KERNEL_OK")
</pallas_src>

<mosaic_0001>
module attributes {stable_mosaic.version = 11 : i64} {
  func.func @fc_kernel(%arg0: memref<128x8xbf16, #tpu.memory_space<vmem>>, %arg1: memref<8x128xbf16, #tpu.memory_space<vmem>>, %arg2: memref<128x128xbf16, #tpu.memory_space<vmem>>, %arg3: memref<128x128xbf16, #tpu.memory_space<vmem>>, %arg4: memref<8x128xf32, #tpu.memory_space<vmem>>, %arg5: memref<128x128xf32, #tpu.memory_space<vmem>>) attributes {dimension_semantics = [], scalar_prefetch = 0 : i64, scratch_operands = 0 : i64, tpu.core_type = #tpu.core_type<tc>} {
    %cst = arith.constant 1.000000e+00 : f32
    %0 = vector.broadcast %cst : f32 to vector<1x128xf32>
    %c0 = arith.constant 0 : index
    %c0_0 = arith.constant 0 : index
    %1 = vector.load %arg0[%c0, %c0_0] : memref<128x8xbf16, #tpu.memory_space<vmem>>, vector<128x8xbf16>
    %c0_1 = arith.constant 0 : index
    %c0_2 = arith.constant 0 : index
    %2 = vector.load %arg4[%c0_1, %c0_2] : memref<8x128xf32, #tpu.memory_space<vmem>>, vector<1x128xf32>
    %c1 = arith.constant 1 : index
    %c0_3 = arith.constant 0 : index
    %3 = vector.load %arg4[%c1, %c0_3] : memref<8x128xf32, #tpu.memory_space<vmem>>, vector<1x128xf32>
    %c0_4 = arith.constant 0 : index
    %c0_5 = arith.constant 0 : index
    %4 = vector.load %arg1[%c0_4, %c0_5] : memref<8x128xbf16, #tpu.memory_space<vmem>>, vector<8x128xbf16>
    %cst_6 = arith.constant dense<0.000000e+00> : vector<128x128xf32>
    %5 = tpu.matmul %1, %4, %cst_6 {dimension_numbers = #tpu.dot_dimension_numbers<[1], [0], [0], [1], [0, 0, 1, 1], [], []>} : vector<128x8xbf16>, vector<8x128xbf16>, vector<128x128xf32> -> vector<128x128xf32>
    %cst_7 = arith.constant dense<0.000000e+00> : vector<1x128xf32>
    %6 = tpu.matmul %0, %5, %cst_7 {dimension_numbers = #tpu.dot_dimension_numbers<[1], [0], [0], [1], [0, 0, 1, 1], [], []>} : vector<1x128xf32>, vector<128x128xf32>, vector<1x128xf32> -> vector<1x128xf32>
    %7 = arith.mulf %5, %5 : vector<128x128xf32>
    %cst_8 = arith.constant dense<0.000000e+00> : vector<1x128xf32>
    %8 = tpu.matmul %0, %7, %cst_8 {dimension_numbers = #tpu.dot_dimension_numbers<[1], [0], [0], [1], [0, 0, 1, 1], [], []>} : vector<1x128xf32>, vector<128x128xf32>, vector<1x128xf32> -> vector<1x128xf32>
    %cst_9 = arith.constant 7.812500e-03 : f32
    %9 = vector.broadcast %cst_9 : f32 to vector<1x128xf32>
    %10 = arith.mulf %6, %9 : vector<1x128xf32>
    %cst_10 = arith.constant 7.812500e-03 : f32
    %11 = vector.broadcast %cst_10 : f32 to vector<1x128xf32>
    %12 = arith.mulf %8, %11 : vector<1x128xf32>
    %13 = arith.mulf %10, %10 : vector<1x128xf32>
    %14 = arith.subf %12, %13 : vector<1x128xf32>
    %cst_11 = arith.constant 0.000000e+00 : f32
    %15 = vector.broadcast %cst_11 : f32 to vector<1x128xf32>
    %16 = arith.maximumf %14, %15 : vector<1x128xf32>
    %cst_12 = arith.constant 9.99999974E-6 : f32
    %17 = vector.broadcast %cst_12 : f32 to vector<1x128xf32>
    %18 = arith.addf %16, %17 : vector<1x128xf32>
    %19 = math.rsqrt %18 : vector<1x128xf32>
    %20 = arith.mulf %2, %19 : vector<1x128xf32>
    %21 = arith.mulf %10, %20 : vector<1x128xf32>
    %22 = arith.subf %3, %21 : vector<1x128xf32>
    %23 = vector.broadcast %20 : vector<1x128xf32> to vector<128x128xf32>
    %24 = arith.mulf %5, %23 : vector<128x128xf32>
    %25 = vector.broadcast %22 : vector<1x128xf32> to vector<128x128xf32>
    %26 = arith.addf %24, %25 : vector<128x128xf32>
    %cst_13 = arith.constant 0.000000e+00 : f32
    %27 = vector.broadcast %cst_13 : f32 to vector<128x128xf32>
    %28 = arith.maximumf %26, %27 : vector<128x128xf32>
    %c2 = arith.constant 2 : index
    %c0_14 = arith.constant 0 : index
    %29 = vector.load %arg4[%c2, %c0_14] : memref<8x128xf32, #tpu.memory_space<vmem>>, vector<1x128xf32>
    %c3 = arith.constant 3 : index
    %c0_15 = arith.constant 0 : index
    %30 = vector.load %arg4[%c3, %c0_15] : memref<8x128xf32, #tpu.memory_space<vmem>>, vector<1x128xf32>
    %31 = arith.truncf %28 : vector<128x128xf32> to vector<128x128xbf16>
    %c0_16 = arith.constant 0 : index
    %c0_17 = arith.constant 0 : index
    %32 = vector.load %arg2[%c0_16, %c0_17] : memref<128x128xbf16, #tpu.memory_space<vmem>>, vector<128x128xbf16>
    %cst_18 = arith.constant dense<0.000000e+00> : vector<128x128xf32>
    %33 = tpu.matmul %31, %32, %cst_18 {dimension_numbers = #tpu.dot_dimension_numbers<[1], [0], [0], [1], [0, 0, 1, 1], [], []>} : vector<128x128xbf16>, vector<128x128xbf16>, vector<128x128xf32> -> vector<128x128xf32>
    %cst_19 = arith.constant dense<0.000000e+00> : vector<1x128xf32>
    %34 = tpu.matmul %0, %33, %cst_19 {dimension_numbers = #tpu.dot_dimension_numbers<[1], [0], [0], [1], [0, 0, 1, 1], [], []>} : vector<1x128xf32>, vector<128x128xf32>, vector<1x128xf32> -> vector<1x128xf32>
    %35 = arith.mulf %33, %33 : vector<128x128xf32>
    %cst_20 = arith.constant dense<0.000000e+00> : vector<1x128xf32>
    %36 = tpu.matmul %0, %35, %cst_20 {dimension_numbers = #tpu.dot_dimension_numbers<[1], [0], [0], [1], [0, 0, 1, 1], [], []>} : vector<1x128xf32>, vector<128x128xf32>, vector<1x128xf32> -> vector<1x128xf32>
    %cst_21 = arith.constant 7.812500e-03 : f32
    %37 = vector.broadcast %cst_21 : f32 to vector<1x128xf32>
    %38 = arith.mulf %34, %37 : vector<1x128xf32>
    %cst_22 = arith.constant 7.812500e-03 : f32
    %39 = vector.broadcast %cst_22 : f32 to vector<1x128xf32>
    %40 = arith.mulf %36, %39 : vector<1x128xf32>
    %41 = arith.mulf %38, %38 : vector<1x128xf32>
    %42 = arith.subf %40, %41 : vector<1x128xf32>
    %cst_23 = arith.constant 0.000000e+00 : f32
    %43 = vector.broadcast %cst_23 : f32 to vector<1x128xf32>
    %44 = arith.maximumf %42, %43 : vector<1x128xf32>
    %cst_24 = arith.constant 9.99999974E-6 : f32
    %45 = vector.broadcast %cst_24 : f32 to vector<1x128xf32>
    %46 = arith.addf %44, %45 : vector<1x128xf32>
    %47 = math.rsqrt %46 : vector<1x128xf32>
    %48 = arith.mulf %29, %47 : vector<1x128xf32>
    %49 = arith.mulf %38, %48 : vector<1x128xf32>
    %50 = arith.subf %30, %49 : vector<1x128xf32>
    %51 = vector.broadcast %48 : vector<1x128xf32> to vector<128x128xf32>
    %52 = arith.mulf %33, %51 : vector<128x128xf32>
    %53 = vector.broadcast %50 : vector<1x128xf32> to vector<128x128xf32>
    %54 = arith.addf %52, %53 : vector<128x128xf32>
    %cst_25 = arith.constant 0.000000e+00 : f32
    %55 = vector.broadcast %cst_25 : f32 to vector<128x128xf32>
    %56 = arith.maximumf %54, %55 : vector<128x128xf32>
    %57 = arith.truncf %56 : vector<128x128xf32> to vector<128x128xbf16>
    %c0_26 = arith.constant 0 : index
    %c0_27 = arith.constant 0 : index
    %58 = vector.load %arg3[%c0_26, %c0_27] : memref<128x128xbf16, #tpu.memory_space<vmem>>, vector<128x128xbf16>
    %cst_28 = arith.constant dense<0.000000e+00> : vector<128x128xf32>
    %59 = tpu.matmul %57, %58, %cst_28 {dimension_numbers = #tpu.dot_dimension_numbers<[1], [0], [0], [1], [0, 0, 1, 1], [], []>} : vector<128x128xbf16>, vector<128x128xbf16>, vector<128x128xf32> -> vector<128x128xf32>
    %c4 = arith.constant 4 : index
    %c0_29 = arith.constant 0 : index
    %60 = vector.load %arg4[%c4, %c0_29] : memref<8x128xf32, #tpu.memory_space<vmem>>, vector<1x128xf32>
    %61 = vector.broadcast %60 : vector<1x128xf32> to vector<128x128xf32>
    %62 = arith.addf %59, %61 : vector<128x128xf32>
    %c0_30 = arith.constant 0 : index
    %c0_31 = arith.constant 0 : index
    %63 = vector.load %arg5[%c0_30, %c0_31] : memref<128x128xf32, #tpu.memory_space<vmem>>, vector<128x128xf32>
    tpu.vector_store %arg5[%c0_30, %c0_31], %62 {strides = array<i32>} : memref<128x128xf32, #tpu.memory_space<vmem>>, vector<128x128xf32>,
    return
  }
}

</mosaic_0001>

<bundles_post_ra>
// kernel: fc_forward.1
= control target key start
LH: loop header
LB: loop body
LE: loop exit
PB: predicated region body
PF: predicated region fallthrough
CT: control target
= control target key end

     0   :  { %vm105_vm0 = vcmask 1043456   ;;  %vm80_vm1 = vcmask 64512   ;;  %v1411_v10 = vmov 0.0   ;;  %vm1412_vm2 = vmmov 0   ;;  %s1864_s1 = inlined_call_operand.vmem [shape: bf16[8,128], index: 1, kind: input, shape index: {}]   ;;  %s1865_s0 = inlined_call_operand.vmem [shape: bf16[128,8], index: 0, kind: input, shape index: {}]   ;;  %s1866_s2 = inlined_call_operand.vmem [shape: bf16[128,128], index: 2, kind: input, shape index: {}]   ;;  %s1867_s4 = inlined_call_operand.vmem [shape: f32[8,128], index: 4, kind: input, shape index: {}]   ;;  %s1868_s3 = inlined_call_operand.vmem [shape: bf16[128,128], index: 3, kind: input, shape index: {}]   ;;  %s1869_s5 = inlined_call_operand.vmem [shape: f32[128,128], index: 5, kind: output, shape index: {}]  }
   0x1   :  { %v39_v0 = vld [vmem:[%s1864_s1] sm:$0xf]  ;;  %v1384_v3 = vld [vmem:[%s1865_s0 + $0x8] sm:$0xff]   ;;  %v1385_v4 = vld [vmem:[%s1865_s0 + $0x10] sm:$0xff]   ;;  %1210 = vmatprep.subr.mxu0 %v1411_v10  ;;  %1242 = vmatprep.mubr.msk.f32.mxu0 %vm1412_vm2, %v1411_v10  ;;  %v1413_v43 = vmov 1.0   ;;  %v372_v62 = vlaneseq }
   0x2   :  { %1379 = vmatprep.subr.msk.bf16.mxu1 %vm105_vm0, %v39_v0  ;;  %v107_v1 = vsel %vm105_vm0, %v39_v0, 0  ;;  %v1383_v2 = vld [vmem:[%s1865_s0] sm:$0xff]   ;;  %v1386_v5 = vld [vmem:[%s1865_s0 + $0x18] sm:$0xff]   ;;  %v1388_v7 = vld [vmem:[%s1865_s0 + $0x28] sm:$0xff]  }
   0x3   :  { %1158 = vmatpush3.bf16.msra.mxu1 %v107_v1  ;;  %1159 = vmatprep.mubr.msk.bf16.mxu1 %vm80_vm1, %v1383_v2  ;;  %v1387_v6 = vld [vmem:[%s1865_s0 + $0x20] sm:$0xff]   ;;  %v1389_v8 = vld [vmem:[%s1865_s0 + $0x30] sm:$0xff]   ;;  %v1390_v9 = vld [vmem:[%s1865_s0 + $0x38] sm:$0xff]   ;;  %v373_v63 = vshrl.u32 %v372_v62, 7 }
   0x4   :  { %1175 = vmatprep.subr.mxu1 %v1411_v10  ;;  %v1391_v44 = vld [vmem:[%s1866_s2 + $0x38] sm:$0xff]   ;;  %v1392_v45 = vld [vmem:[%s1866_s2 + $0x30] sm:$0xff]   ;;  %v1393_v46 = vld [vmem:[%s1866_s2 + $0x28] sm:$0xff]  }
   0x5   :  { %v1394_v47 = vld [vmem:[%s1866_s2 + $0x20] sm:$0xff]   ;;  %v1395_v48 = vld [vmem:[%s1866_s2 + $0x18] sm:$0xff]   ;;  %v1396_v49 = vld [vmem:[%s1866_s2 + $0x10] sm:$0xff]   ;;  %v1628_v1 = vsub.s32 0, %v373_v63 }
   0x6   :  { %1160 = vmatmul.mubr.msk.bf16.vlgmr.msra.gmra.mxu1 %vm80_vm1, %v1384_v3  ;;  %v1397_v50 = vld [vmem:[%s1866_s2 + $0x8] sm:$0xff]   ;;  %v1398_v51 = vld [vmem:[%s1866_s2] sm:$0xff]  }
   0x7   :  { %1163 = vmatprep.mubr.msk.bf16.mxu1 %vm80_vm1, %v1385_v4  ;;  %v37_v0 = vld [vmem:[%s1867_s4] sm:$0x1]  ;;  %v38_v4 = vld [vmem:[%s1867_s4 + $0x1] sm:$0x1] }
   0xe   :  { %1164 = vmatmul.mubr.msk.bf16.gmra.mxu1 %vm80_vm1, %v1386_v5 }
   0xf   :  { %1167 = vmatprep.mubr.msk.bf16.mxu1 %vm80_vm1, %v1387_v6 }
  0x16   :  { %1168 = vmatmul.mubr.msk.bf16.gmra.mxu1 %vm80_vm1, %v1388_v7 }
  0x17   :  { %1171 = vmatprep.mubr.msk.bf16.mxu1 %vm80_vm1, %v1389_v8 }
  0x1e   :  { %1172 = vmatmul.mubr.msk.bf16.gmra.mxu1 %vm80_vm1, %v1390_v9 }
  0x1f   :  { %1207 = vmatprep.mubr.msk.f32.mxu1 %vm1412_vm2, %v1411_v10 }
  0xc6   :  { %v1485_v11 = vpop.f32.mrf.mxu1 }
  0xc7   :  { %v278_v40 = vmul.f32 %v1485_v11, %v1485_v11 }
  0xc8   :  { %v1487_v12 = vpop.f32.mrf.mxu1 }
  0xc9   :  { %v276_v42 = vmul.f32 %v1487_v12, %v1487_v12 }
  0xca   :  { %v1489_v13 = vpop.f32.mrf.mxu1 }
  0xcb   :  { %v279_v39 = vmul.f32 %v1489_v13, %v1489_v13 }
  0xcc   :  { %v1491_v14 = vpop.f32.mrf.mxu1 }
  0xcd   :  { %v277_v41 = vmul.f32 %v1491_v14, %v1491_v14 }
  0xce   :  { %v1493_v15 = vpop.f32.mrf.mxu1 }
  0xcf   :  { %v282_v36 = vmul.f32 %v1493_v15, %v1493_v15 }
  0xd0   :  { %v1495_v16 = vpop.f32.mrf.mxu1 }
  0xd1   :  { %v280_v38 = vmul.f32 %v1495_v16, %v1495_v16 }
  0xd2   :  { %v1497_v17 = vpop.f32.mrf.mxu1 }
  0xd3   :  { %v283_v35 = vmul.f32 %v1497_v17, %v1497_v17 }
  0xd4   :  { %v1499_v18 = vpop.f32.mrf.mxu1 }
  0xd5   :  { %v281_v37 = vmul.f32 %v1499_v18, %v1499_v18 }
  0xd6   :  { %v1501_v19 = vpop.f32.mrf.mxu1 }
  0xd7   :  { %v286_v32 = vmul.f32 %v1501_v19, %v1501_v19 }
  0xd8   :  { %v1503_v20 = vpop.f32.mrf.mxu1 }
  0xd9   :  { %v284_v34 = vmul.f32 %v1503_v20, %v1503_v20 }
  0xda   :  { %v1505_v21 = vpop.f32.mrf.mxu1 }
  0xdb   :  { %v287_v31 = vmul.f32 %v1505_v21, %v1505_v21 }
  0xdc   :  { %v1507_v22 = vpop.f32.mrf.mxu1 }
  0xdd   :  { %v285_v33 = vmul.f32 %v1507_v22, %v1507_v22 }
  0xde   :  { %v1509_v23 = vpop.f32.mrf.mxu1 }
  0xdf   :  { %v290_v28 = vmul.f32 %v1509_v23, %v1509_v23 }
  0xe0   :  { %v1511_v24 = vpop.f32.mrf.mxu1 }
  0xe1   :  { %v288_v30 = vmul.f32 %v1511_v24, %v1511_v24 }
  0xe2   :  { %v1513_v25 = vpop.f32.mrf.mxu1 }
  0xe3   :  { %1176 = vmatpush3.msra.mxu1 %v1513_v25  ;;  %v291_v26 = vmul.f32 %v1513_v25, %v1513_v25 }
  0xe4   :  { %v1518_v27 = vpop.f32.mrf.mxu1  ;;  %1177 = vmatprep.subr.mxu1 %v1411_v10 }
  0xe5   :  { %1178 = vmatpush3.msra.mxu1 %v1509_v23  ;;  %1211 = vmatpush3.msra.mxu0 %v291_v26  ;;  %v289_v29 = vmul.f32 %v1518_v27, %v1518_v27 }
  0xe6   :  { %1179 = vmatprep.subr.mxu1 %v1411_v10  ;;  %1212 = vmatprep.subr.mxu0 %v1411_v10 }
  0xe7   :  { %1180 = vmatpush3.msra.mxu1 %v1518_v27  ;;  %1213 = vmatpush3.msra.mxu0 %v290_v28 }
  0xe8   :  { %1181 = vmatprep.subr.mxu1 %v1411_v10  ;;  %1214 = vmatprep.subr.mxu0 %v1411_v10 }
  0xe9   :  { %1182 = vmatpush3.msra.mxu1 %v1511_v24  ;;  %1215 = vmatpush3.msra.mxu0 %v289_v29 }
  0xea   :  { %1183 = vmatprep.subr.mxu1 %v1411_v10  ;;  %1216 = vmatprep.subr.mxu0 %v1411_v10 }
  0xeb   :  { %1184 = vmatpush3.msra.mxu1 %v1505_v21  ;;  %1217 = vmatpush3.msra.mxu0 %v288_v30 }
  0xec   :  { %1185 = vmatprep.subr.mxu1 %v1411_v10  ;;  %1218 = vmatprep.subr.mxu0 %v1411_v10 }
  0xed   :  { %1186 = vmatpush3.msra.mxu1 %v1501_v19  ;;  %1219 = vmatpush3.msra.mxu0 %v287_v31 }
  0xee   :  { %1187 = vmatprep.subr.mxu1 %v1411_v10  ;;  %1220 = vmatprep.subr.mxu0 %v1411_v10 }
  0xef   :  { %1188 = vmatpush3.msra.mxu1 %v1507_v22  ;;  %1221 = vmatpush3.msra.mxu0 %v286_v32 }
  0xf0   :  { %1189 = vmatprep.subr.mxu1 %v1411_v10  ;;  %1222 = vmatprep.subr.mxu0 %v1411_v10 }
  0xf1   :  { %1190 = vmatpush3.msra.mxu1 %v1503_v20  ;;  %1223 = vmatpush3.msra.mxu0 %v285_v33 }
  0xf2   :  { %1191 = vmatprep.subr.mxu1 %v1411_v10  ;;  %1224 = vmatprep.subr.mxu0 %v1411_v10 }
  0xf3   :  { %1192 = vmatpush3.msra.mxu1 %v1497_v17  ;;  %1225 = vmatpush3.msra.mxu0 %v284_v34 }
  0xf4   :  { %1193 = vmatprep.subr.mxu1 %v1411_v10  ;;  %1226 = vmatprep.subr.mxu0 %v1411_v10 }
  0xf5   :  { %1194 = vmatpush3.msra.mxu1 %v1493_v15  ;;  %1227 = vmatpush3.msra.mxu0 %v283_v35 }
  0xf6   :  { %1195 = vmatprep.subr.mxu1 %v1411_v10  ;;  %1228 = vmatprep.subr.mxu0 %v1411_v10 }
  0xf7   :  { %1196 = vmatpush3.msra.mxu1 %v1499_v18  ;;  %1229 = vmatpush3.msra.mxu0 %v282_v36 }
  0xf8   :  { %1197 = vmatprep.subr.mxu1 %v1411_v10  ;;  %1230 = vmatprep.subr.mxu0 %v1411_v10 }
  0xf9   :  { %1198 = vmatpush3.msra.mxu1 %v1495_v16  ;;  %1231 = vmatpush3.msra.mxu0 %v281_v37 }
  0xfa   :  { %1199 = vmatprep.subr.mxu1 %v1411_v10  ;;  %1232 = vmatprep.subr.mxu0 %v1411_v10 }
  0xfb   :  { %1200 = vmatpush3.msra.mxu1 %v1489_v13  ;;  %1233 = vmatpush3.msra.mxu0 %v280_v38 }
  0xfc   :  { %1201 = vmatprep.subr.mxu1 %v1411_v10  ;;  %1234 = vmatprep.subr.mxu0 %v1411_v10 }
  0xfd   :  { %1202 = vmatpush3.msra.mxu1 %v1485_v11  ;;  %1235 = vmatpush3.msra.mxu0 %v279_v39 }
  0xfe   :  { %1203 = vmatprep.subr.mxu1 %v1411_v10  ;;  %1236 = vmatprep.subr.mxu0 %v1411_v10 }
  0xff   :  { %1204 = vmatpush3.msra.mxu1 %v1491_v14  ;;  %1237 = vmatpush3.msra.mxu0 %v278_v40 }
 0x100   :  { %1205 = vmatprep.subr.mxu1 %v1411_v10  ;;  %1238 = vmatprep.subr.mxu0 %v1411_v10 }
 0x101   :  { %1206 = vmatpush3.msra.mxu1 %v1487_v12  ;;  %1239 = vmatpush3.msra.mxu0 %v277_v41 }
 0x102   :  { %1208 = vmatmul.mubr.f32.vlgmr.msra.gmra.mxu1 %v1413_v43  ;;  %1240 = vmatprep.subr.mxu0 %v1411_v10 }
 0x103   :  { %1241 = vmatpush3.msra.mxu0 %v276_v42  ;;  %1245 = vmatprep.subr.bf16.mxu1 %v1391_v44 }
 0x104   :  { %1243 = vmatmul.mubr.f32.vlgmr.msra.gmra.mxu0 %v1413_v43  ;;  %1277 = vmatprep.subr.mxu0 %v1411_v10 }
 0x105   :  { %1309 = vmatprep.mubr.msk.f32.mxu0 %vm1412_vm2, %v1411_v10  ;;  %1246 = vmatpush3.bf16.msra.mxu1 %v1391_v44 }
 0x106   :  { %1247 = vmatprep.subr.bf16.mxu1 %v1392_v45 }
 0x109   :  { %1248 = vmatpush3.bf16.msra.mxu1 %v1392_v45 }
 0x10a   :  { %1249 = vmatprep.subr.bf16.mxu1 %v1393_v46 }
 0x10d   :  { %1250 = vmatpush3.bf16.msra.mxu1 %v1393_v46 }
 0x10e   :  { %1251 = vmatprep.subr.bf16.mxu1 %v1394_v47 }
 0x111   :  { %1252 = vmatpush3.bf16.msra.mxu1 %v1394_v47 }
 0x112   :  { %1253 = vmatprep.subr.bf16.mxu1 %v1395_v48 }
 0x115   :  { %1254 = vmatpush3.bf16.msra.mxu1 %v1395_v48 }
 0x116   :  { %1255 = vmatprep.subr.bf16.mxu1 %v1396_v49 }
 0x119   :  { %1256 = vmatpush3.bf16.msra.mxu1 %v1396_v49 }
 0x11a   :  { %1257 = vmatprep.subr.bf16.mxu1 %v1397_v50 }
 0x11d   :  { %1258 = vmatpush3.bf16.msra.mxu1 %v1397_v50 }
 0x11e   :  { %1259 = vmatprep.subr.bf16.mxu1 %v1398_v51 }
 0x121   :  { %1260 = vmatpush3.bf16.msra.mxu1 %v1398_v51 }
 0x122   :  { %1312 = vmatprep.subr.mxu1 %v1411_v10 }
 0x1c2   :  { %v272_v52 = vpop.f32.mrf.mxu1 }
 0x1c3   :  { %v362_v53 = vmul.f32 0.0078125, %v272_v52 }
 0x1c4   :  { %v1209_v54 = vpop.f32.mrf.mxu1  ;;  %v358_v55 = vpop.f32.mrf.mxu0 }
 0x1c5   :  { %v364_v56 = vmul.f32 %v362_v53, %v362_v53  ;;  %v363_v57 = vmul.f32 0.0078125, %v358_v55 }
 0x1c6   :  { %v1244_v58 = vpop.f32.mrf.mxu0 }
 0x1c7   :  { %v365_v59 = vsub.f32 %v363_v57, %v364_v56 }
 0x1c9   :  { %v366_v60 = vmax.f32 %v365_v59, 0.0 }
 0x1cb   :  { %v367_v61 = vadd.f32 1e-05, %v366_v60 }
 0x1cd   :  { %1407 = vrsqrt.f32 %v367_v61 }
 0x1da   :  { %v1408_v2 = vpop.eup %1407 }
 0x1db   :  { %v369_v3 = vmul.f32 %v1408_v2, %v37_v0 }
 0x1dd   :  { %v370_v5 = vmul.f32 %v369_v3, %v362_v53  ;;  %v375_v6 = vrot.slane %v369_v3, %v1628_v1 }
 0x1df   :  { %v371_v7 = vsub.f32 %v38_v4, %v370_v5  ;;  %v376_v8 = vmul.f32 %v375_v6, %v1487_v12  ;;  %v377_v26 = vmul.f32 %v375_v6, %v1491_v14  ;;  %v378_v28 = vmul.f32 %v1485_v11, %v375_v6 }
 0x1e0   :  { %v379_v29 = vmul.f32 %v1489_v13, %v375_v6  ;;  %v380_v30 = vmul.f32 %v375_v6, %v1495_v16  ;;  %v381_v31 = vmul.f32 %v375_v6, %v1499_v18  ;;  %v382_v11 = vmul.f32 %v1493_v15, %v375_v6 }
 0x1e1   :  { %v395_v9 = vrot.slane %v371_v7, %v1628_v1  ;;  %v383_v13 = vmul.f32 %v1497_v17, %v375_v6  ;;  %v384_v18 = vmul.f32 %v375_v6, %v1503_v20  ;;  %v385_v44 = vmul.f32 %v375_v6, %v1507_v22 }
 0x1e2   :  { %v386_v17 = vmul.f32 %v1501_v19, %v375_v6  ;;  %v387_v53 = vmul.f32 %v1505_v21, %v375_v6  ;;  %v388_v20 = vmul.f32 %v375_v6, %v1511_v24  ;;  %v389_v22 = vmul.f32 %v375_v6, %v1518_v27 }
 0x1e3   :  { %v396_v32 = vadd.f32 %v395_v9, %v376_v8  ;;  %v397_v33 = vadd.f32 %v395_v9, %v377_v26  ;;  %v398_v34 = vadd.f32 %v395_v9, %v378_v28  ;;  %v399_v35 = vadd.f32 %v395_v9, %v379_v29 }
 0x1e4   :  { %v400_v36 = vadd.f32 %v395_v9, %v380_v30  ;;  %v401_v37 = vadd.f32 %v395_v9, %v381_v31  ;;  %v402_v45 = vadd.f32 %v395_v9, %v382_v11  ;;  %v403_v46 = vadd.f32 %v395_v9, %v383_v13 }
 0x1e5   :  { %v412_v38 = vmax.f32 %v396_v32, 0.0  ;;  %v413_v12 = vmax.f32 %v397_v33, 0.0  ;;  %v414_v39 = vmax.f32 %v398_v34, 0.0  ;;  %v415_v40 = vmax.f32 %v399_v35, 0.0 }
 0x1e6   :  { %v416_v41 = vmax.f32 %v400_v36, 0.0  ;;  %v417_v14 = vmax.f32 %v401_v37, 0.0  ;;  %v404_v48 = vadd.f32 %v395_v9, %v384_v18  ;;  %v405_v49 = vadd.f32 %v395_v9, %v385_v44 }
 0x1e7   :  { %v430_v42 = vpack.c.bf16 %v413_v12, %v412_v38  ;;  %v431_v16 = vpack.c.bf16 %v415_v40, %v414_v39  ;;  %v418_v50 = vmax.f32 %v402_v45, 0.0  ;;  %v419_v51 = vmax.f32 %v403_v46, 0.0 }
 0x1e8   :  { %v432_v47 = vpack.c.bf16 %v417_v14, %v416_v41  ;;  %v420_v52 = vmax.f32 %v404_v48, 0.0  ;;  %v421_v15 = vmax.f32 %v405_v49, 0.0  ;;  %v406_v55 = vadd.f32 %v395_v9, %v386_v17  ;;  %v1399_v48 = vld [vmem:[%s1868_s3 + $0x38] sm:$0xff]   ;;  %v1400_v49 = vld [vmem:[%s1868_s3 + $0x30] sm:$0xff]  }
 0x1e9   :  { %1261 = vmatprep.mubr.bf16.mxu1 %v430_v42  ;;  %v433_v54 = vpack.c.bf16 %v419_v51, %v418_v50  ;;  %v407_v56 = vadd.f32 %v395_v9, %v387_v53  ;;  %v408_v58 = vadd.f32 %v395_v9, %v388_v20  ;;  %v409_v59 = vadd.f32 %v395_v9, %v389_v22  ;;  %v1401_v50 = vld [vmem:[%s1868_s3 + $0x28] sm:$0xff]   ;;  %v1404_v51 = vld [vmem:[%s1868_s3 + $0x10] sm:$0xff]  }
 0x1ea   :  { %1262 = vmatmul.mubr.bf16.vlgmr.msra.gmra.mxu1 %v431_v16  ;;  %v434_v57 = vpack.c.bf16 %v421_v15, %v420_v52  ;;  %v422_v60 = vmax.f32 %v406_v55, 0.0  ;;  %v390_v19 = vmul.f32 %v1509_v23, %v375_v6  ;;  %v391_v21 = vmul.f32 %v1513_v25, %v375_v6  ;;  %v1405_v52 = vld [vmem:[%s1868_s3 + $0x8] sm:$0xff]   ;;  %v1406_v15 = vld [vmem:[%s1868_s3] sm:$0xff]  }
 0x1eb   :  { %1265 = vmatprep.mubr.bf16.mxu1 %v432_v47  ;;  %v423_v61 = vmax.f32 %v407_v56, 0.0  ;;  %v424_v62 = vmax.f32 %v408_v58, 0.0  ;;  %v425_v63 = vmax.f32 %v409_v59, 0.0 }
 0x1ec   :  { %v410_v24 = vadd.f32 %v395_v9, %v390_v19  ;;  %v411_v2 = vadd.f32 %v395_v9, %v391_v21 }
 0x1ed   :  { %v435_v0 = vpack.c.bf16 %v423_v61, %v422_v60  ;;  %v436_v27 = vpack.c.bf16 %v425_v63, %v424_v62  ;;  %v428_v60 = vld [vmem:[%s1867_s4 + $0x2] sm:$0x1]  ;;  %v429_v63 = vld [vmem:[%s1867_s4 + $0x3] sm:$0x1] }
 0x1ee   :  { %v426_v3 = vmax.f32 %v410_v24, 0.0  ;;  %v427_v4 = vmax.f32 %v411_v2, 0.0 }
 0x1f0   :  { %v437_v5 = vpack.c.bf16 %v427_v4, %v426_v3 }
 0x1f2   :  { %1266 = vmatmul.mubr.bf16.gmra.mxu1 %v433_v54 }
 0x1f3   :  { %1269 = vmatprep.mubr.bf16.mxu1 %v434_v57 }
 0x1fa   :  { %1270 = vmatmul.mubr.bf16.gmra.mxu1 %v435_v0 }
 0x1fb   :  { %1273 = vmatprep.mubr.bf16.mxu1 %v436_v27 }
 0x202   :  { %1274 = vmatmul.mubr.bf16.gmra.mxu1 %v437_v5 }
 0x203   :  { %1344 = vmatprep.mubr.msk.f32.mxu1 %vm1412_vm2, %v1411_v10 }
 0x2aa   :  { %v1653_v7 = vpop.f32.mrf.mxu1 }
 0x2ab   :  { %v671_v45 = vmul.f32 %v1653_v7, %v1653_v7 }
 0x2ac   :  { %v1655_v8 = vpop.f32.mrf.mxu1 }
 0x2ad   :  { %v669_v47 = vmul.f32 %v1655_v8, %v1655_v8 }
 0x2ae   :  { %v1657_v23 = vpop.f32.mrf.mxu1 }
 0x2af   :  { %v672_v44 = vmul.f32 %v1657_v23, %v1657_v23 }
 0x2b0   :  { %v1659_v25 = vpop.f32.mrf.mxu1 }
 0x2b1   :  { %v670_v46 = vmul.f32 %v1659_v25, %v1659_v25 }
 0x2b2   :  { %v1661_v6 = vpop.f32.mrf.mxu1 }
 0x2b3   :  { %v675_v42 = vmul.f32 %v1661_v6, %v1661_v6 }
 0x2b4   :  { %v1663_v9 = vpop.f32.mrf.mxu1 }
 0x2b5   :  { %v673_v18 = vmul.f32 %v1663_v9, %v1663_v9 }
 0x2b6   :  { %v1665_v26 = vpop.f32.mrf.mxu1 }
 0x2b7   :  { %v676_v13 = vmul.f32 %v1665_v26, %v1665_v26 }
 0x2b8   :  { %v1667_v28 = vpop.f32.mrf.mxu1 }
 0x2b9   :  { %v674_v16 = vmul.f32 %v1667_v28, %v1667_v28 }
 0x2ba   :  { %v1669_v29 = vpop.f32.mrf.mxu1 }
 0x2bb   :  { %v679_v41 = vmul.f32 %v1669_v29, %v1669_v29 }
 0x2bc   :  { %v1671_v30 = vpop.f32.mrf.mxu1 }
 0x2bd   :  { %v677_v11 = vmul.f32 %v1671_v30, %v1671_v30 }
 0x2be   :  { %v1673_v31 = vpop.f32.mrf.mxu1 }
 0x2bf   :  { %v680_v40 = vmul.f32 %v1673_v31, %v1673_v31 }
 0x2c0   :  { %v1675_v32 = vpop.f32.mrf.mxu1 }
 0x2c1   :  { %v678_v14 = vmul.f32 %v1675_v32, %v1675_v32 }
 0x2c2   :  { %v1677_v33 = vpop.f32.mrf.mxu1 }
 0x2c3   :  { %v683_v38 = vmul.f32 %v1677_v33, %v1677_v33 }
 0x2c4   :  { %v1679_v34 = vpop.f32.mrf.mxu1 }
 0x2c5   :  { %v681_v39 = vmul.f32 %v1679_v34, %v1679_v34 }
 0x2c6   :  { %v1681_v35 = vpop.f32.mrf.mxu1 }
 0x2c7   :  { %v684_v36 = vmul.f32 %v1681_v35, %v1681_v35  ;;  %1278 = vmatpush3.msra.mxu0 %v1681_v35 }
 0x2c8   :  { %v1686_v37 = vpop.f32.mrf.mxu1  ;;  %1279 = vmatprep.subr.mxu0 %v1411_v10 }
 0x2c9   :  { %1280 = vmatpush3.msra.mxu0 %v1677_v33  ;;  %1313 = vmatpush3.msra.mxu1 %v684_v36  ;;  %v682_v12 = vmul.f32 %v1686_v37, %v1686_v37 }
 0x2ca   :  { %1281 = vmatprep.subr.mxu0 %v1411_v10  ;;  %1314 = vmatprep.subr.mxu1 %v1411_v10 }
 0x2cb   :  { %1282 = vmatpush3.msra.mxu0 %v1686_v37  ;;  %1315 = vmatpush3.msra.mxu1 %v683_v38 }
 0x2cc   :  { %1283 = vmatprep.subr.mxu0 %v1411_v10  ;;  %1316 = vmatprep.subr.mxu1 %v1411_v10 }
 0x2cd   :  { %1284 = vmatpush3.msra.mxu0 %v1679_v34  ;;  %1317 = vmatpush3.msra.mxu1 %v682_v12 }
 0x2ce   :  { %1285 = vmatprep.subr.mxu0 %v1411_v10  ;;  %1318 = vmatprep.subr.mxu1 %v1411_v10 }
 0x2cf   :  { %1286 = vmatpush3.msra.mxu0 %v1673_v31  ;;  %1319 = vmatpush3.msra.mxu1 %v681_v39 }
 0x2d0   :  { %1287 = vmatprep.subr.mxu0 %v1411_v10  ;;  %1320 = vmatprep.subr.mxu1 %v1411_v10 }
 0x2d1   :  { %1288 = vmatpush3.msra.mxu0 %v1669_v29  ;;  %1321 = vmatpush3.msra.mxu1 %v680_v40 }
 0x2d2   :  { %1289 = vmatprep.subr.mxu0 %v1411_v10  ;;  %1322 = vmatprep.subr.mxu1 %v1411_v10 }
 0x2d3   :  { %1290 = vmatpush3.msra.mxu0 %v1675_v32  ;;  %1323 = vmatpush3.msra.mxu1 %v679_v41 }
 0x2d4   :  { %1291 = vmatprep.subr.mxu0 %v1411_v10  ;;  %1324 = vmatprep.subr.mxu1 %v1411_v10 }
 0x2d5   :  { %1292 = vmatpush3.msra.mxu0 %v1671_v30  ;;  %1325 = vmatpush3.msra.mxu1 %v678_v14 }
 0x2d6   :  { %1293 = vmatprep.subr.mxu0 %v1411_v10  ;;  %1326 = vmatprep.subr.mxu1 %v1411_v10 }
 0x2d7   :  { %1294 = vmatpush3.msra.mxu0 %v1665_v26  ;;  %1327 = vmatpush3.msra.mxu1 %v677_v11 }
 0x2d8   :  { %1295 = vmatprep.subr.mxu0 %v1411_v10  ;;  %1328 = vmatprep.subr.mxu1 %v1411_v10 }
 0x2d9   :  { %1296 = vmatpush3.msra.mxu0 %v1661_v6  ;;  %1329 = vmatpush3.msra.mxu1 %v676_v13 }
 0x2da   :  { %1297 = vmatprep.subr.mxu0 %v1411_v10  ;;  %1330 = vmatprep.subr.mxu1 %v1411_v10 }
 0x2db   :  { %1298 = vmatpush3.msra.mxu0 %v1667_v28  ;;  %1331 = vmatpush3.msra.mxu1 %v675_v42 }
 0x2dc   :  { %1299 = vmatprep.subr.mxu0 %v1411_v10  ;;  %1332 = vmatprep.subr.mxu1 %v1411_v10 }
 0x2dd   :  { %1300 = vmatpush3.msra.mxu0 %v1663_v9  ;;  %1333 = vmatpush3.msra.mxu1 %v674_v16 }
 0x2de   :  { %1301 = vmatprep.subr.mxu0 %v1411_v10  ;;  %1334 = vmatprep.subr.mxu1 %v1411_v10 }
 0x2df   :  { %1302 = vmatpush3.msra.mxu0 %v1657_v23  ;;  %1335 = vmatpush3.msra.mxu1 %v673_v18 }
 0x2e0   :  { %1303 = vmatprep.subr.mxu0 %v1411_v10  ;;  %1336 = vmatprep.subr.mxu1 %v1411_v10 }
 0x2e1   :  { %1304 = vmatpush3.msra.mxu0 %v1653_v7  ;;  %1337 = vmatpush3.msra.mxu1 %v672_v44 }
 0x2e2   :  { %1305 = vmatprep.subr.mxu0 %v1411_v10  ;;  %1338 = vmatprep.subr.mxu1 %v1411_v10 }
 0x2e3   :  { %1306 = vmatpush3.msra.mxu0 %v1659_v25  ;;  %1339 = vmatpush3.msra.mxu1 %v671_v45 }
 0x2e4   :  { %1307 = vmatprep.subr.mxu0 %v1411_v10  ;;  %1340 = vmatprep.subr.mxu1 %v1411_v10 }
 0x2e5   :  { %1308 = vmatpush3.msra.mxu0 %v1655_v8  ;;  %1341 = vmatpush3.msra.mxu1 %v670_v46 }
 0x2e6   :  { %1310 = vmatmul.mubr.f32.vlgmr.msra.gmra.mxu0 %v1413_v43  ;;  %1342 = vmatprep.subr.mxu1 %v1411_v10  ;;  %v1402_v10 = vld [vmem:[%s1868_s3 + $0x20] sm:$0xff]  }
 0x2e7   :  { %1343 = vmatpush3.msra.mxu1 %v669_v47  ;;  %1347 = vmatprep.subr.bf16.mxu0 %v1399_v48 }
 0x2e8   :  { %1345 = vmatmul.mubr.f32.vlgmr.msra.gmra.mxu1 %v1413_v43  ;;  %1348 = vmatpush3.bf16.msra.mxu0 %v1399_v48  ;;  %v1403_v43 = vld [vmem:[%s1868_s3 + $0x18] sm:$0xff]  }
 0x2e9   :  { %1349 = vmatprep.subr.bf16.mxu0 %v1400_v49 }
 0x2ec   :  { %1350 = vmatpush3.bf16.msra.mxu0 %v1400_v49 }
 0x2ed   :  { %1351 = vmatprep.subr.bf16.mxu0 %v1401_v50 }
 0x2f0   :  { %1352 = vmatpush3.bf16.msra.mxu0 %v1401_v50 }
 0x2f1   :  { %1353 = vmatprep.subr.bf16.mxu0 %v1402_v10 }
 0x2f4   :  { %1354 = vmatpush3.bf16.msra.mxu0 %v1402_v10 }
 0x2f5   :  { %1355 = vmatprep.subr.bf16.mxu0 %v1403_v43 }
 0x2f8   :  { %1356 = vmatpush3.bf16.msra.mxu0 %v1403_v43 }
 0x2f9   :  { %1357 = vmatprep.subr.bf16.mxu0 %v1404_v51 }
 0x2fc   :  { %1358 = vmatpush3.bf16.msra.mxu0 %v1404_v51 }
 0x2fd   :  { %1359 = vmatprep.subr.bf16.mxu0 %v1405_v52 }
 0x300   :  { %1360 = vmatpush3.bf16.msra.mxu0 %v1405_v52 }
 0x301   :  { %1361 = vmatprep.subr.bf16.mxu0 %v1406_v15 }
 0x304   :  { %1362 = vmatpush3.bf16.msra.mxu0 %v1406_v15 }
 0x3a6   :  { %v665_v17 = vpop.f32.mrf.mxu0 }
 0x3a7   :  { %v755_v53 = vmul.f32 0.0078125, %v665_v17 }
 0x3a8   :  { %v1311_v20 = vpop.f32.mrf.mxu0  ;;  %v751_v22 = vpop.f32.mrf.mxu1 }
 0x3a9   :  { %v757_v54 = vmul.f32 %v755_v53, %v755_v53  ;;  %v756_v55 = vmul.f32 0.0078125, %v751_v22 }
 0x3aa   :  { %v1346_v56 = vpop.f32.mrf.mxu1 }
 0x3ab   :  { %v758_v57 = vsub.f32 %v756_v55, %v757_v54 }
 0x3ad   :  { %v759_v58 = vmax.f32 %v758_v57, 0.0 }
 0x3af   :  { %v760_v59 = vadd.f32 1e-05, %v759_v58 }
 0x3b1   :  { %1409 = vrsqrt.f32 %v760_v59 }
 0x3be   :  { %v1410_v61 = vpop.eup %1409 }
 0x3bf   :  { %v762_v62 = vmul.f32 %v1410_v61, %v428_v60 }
 0x3c1   :  { %v763_v19 = vmul.f32 %v762_v62, %v755_v53  ;;  %v768_v21 = vrot.slane %v762_v62, %v1628_v1  ;;  %v1039_v62 = vld [vmem:[%s1867_s4 + $0x4] ss:$0 sm:$0xff] }
 0x3c3   :  { %v764_v0 = vsub.f32 %v429_v63, %v763_v19  ;;  %v769_v24 = vmul.f32 %v768_v21, %v1655_v8  ;;  %v770_v27 = vmul.f32 %v768_v21, %v1659_v25  ;;  %v771_v3 = vmul.f32 %v1653_v7, %v768_v21 }
 0x3c4   :  { %v772_v4 = vmul.f32 %v1657_v23, %v768_v21  ;;  %v773_v5 = vmul.f32 %v768_v21, %v1663_v9  ;;  %v774_v36 = vmul.f32 %v768_v21, %v1667_v28  ;;  %v775_v7 = vmul.f32 %v1661_v6, %v768_v21 }
 0x3c5   :  { %v788_v2 = vrot.slane %v764_v0, %v1628_v1  ;;  %v776_v23 = vmul.f32 %v1665_v26, %v768_v21  ;;  %v777_v28 = vmul.f32 %v768_v21, %v1671_v30  ;;  %v778_v18 = vmul.f32 %v768_v21, %v1675_v32 }
 0x3c6   :  { %v779_v26 = vmul.f32 %v1669_v29, %v768_v21  ;;  %v780_v43 = vmul.f32 %v1673_v31, %v768_v21  ;;  %v781_v30 = vmul.f32 %v768_v21, %v1679_v34  ;;  %v782_v32 = vmul.f32 %v768_v21, %v1686_v37 }
 0x3c7   :  { %v789_v38 = vadd.f32 %v788_v2, %v769_v24  ;;  %v790_v12 = vadd.f32 %v788_v2, %v770_v27  ;;  %v791_v39 = vadd.f32 %v788_v2, %v771_v3  ;;  %v792_v40 = vadd.f32 %v788_v2, %v772_v4 }
 0x3c8   :  { %v793_v41 = vadd.f32 %v788_v2, %v773_v5  ;;  %v794_v14 = vadd.f32 %v788_v2, %v774_v36  ;;  %v795_v44 = vadd.f32 %v788_v2, %v775_v7  ;;  %v796_v45 = vadd.f32 %v788_v2, %v776_v23 }
 0x3c9   :  { %v805_v11 = vmax.f32 %v789_v38, 0.0  ;;  %v806_v8 = vmax.f32 %v790_v12, 0.0  ;;  %v807_v13 = vmax.f32 %v791_v39, 0.0  ;;  %v808_v1 = vmax.f32 %v792_v40, 0.0 }
 0x3ca   :  { %v809_v42 = vmax.f32 %v793_v41, 0.0  ;;  %v810_v25 = vmax.f32 %v794_v14, 0.0  ;;  %v797_v47 = vadd.f32 %v788_v2, %v777_v28  ;;  %v798_v48 = vadd.f32 %v788_v2, %v778_v18 }
 0x3cb   :  { %v821_v16 = vpack.c.bf16 %v806_v8, %v805_v11  ;;  %v822_v9 = vpack.c.bf16 %v808_v1, %v807_v13  ;;  %v811_v49 = vmax.f32 %v795_v44, 0.0  ;;  %v812_v50 = vmax.f32 %v796_v45, 0.0 }
 0x3cc   :  { %v823_v46 = vpack.c.bf16 %v810_v25, %v809_v42  ;;  %v813_v10 = vmax.f32 %v797_v47, 0.0  ;;  %v814_v6 = vmax.f32 %v798_v48, 0.0  ;;  %v799_v52 = vadd.f32 %v788_v2, %v779_v26 }
 0x3cd   :  { %1363 = vmatprep.mubr.bf16.mxu0 %v821_v16  ;;  %v824_v51 = vpack.c.bf16 %v812_v50, %v811_v49  ;;  %v800_v15 = vadd.f32 %v788_v2, %v780_v43  ;;  %v801_v53 = vadd.f32 %v788_v2, %v781_v30  ;;  %v802_v20 = vadd.f32 %v788_v2, %v782_v32 }
 0x3ce   :  { %1364 = vmatmul.mubr.bf16.vlgmr.msra.gmra.mxu0 %v822_v9  ;;  %v825_v17 = vpack.c.bf16 %v814_v6, %v813_v10  ;;  %v815_v22 = vmax.f32 %v799_v52, 0.0  ;;  %v783_v29 = vmul.f32 %v1677_v33, %v768_v21  ;;  %v784_v31 = vmul.f32 %v1681_v35, %v768_v21 }
 0x3cf   :  { %1367 = vmatprep.mubr.bf16.mxu0 %v823_v46  ;;  %v816_v54 = vmax.f32 %v800_v15, 0.0  ;;  %v817_v55 = vmax.f32 %v801_v53, 0.0  ;;  %v818_v56 = vmax.f32 %v802_v20, 0.0 }
 0x3d0   :  { %v803_v34 = vadd.f32 %v788_v2, %v783_v29  ;;  %v804_v58 = vadd.f32 %v788_v2, %v784_v31 }
 0x3d1   :  { %v826_v57 = vpack.c.bf16 %v816_v54, %v815_v22  ;;  %v827_v37 = vpack.c.bf16 %v818_v56, %v817_v55 }
 0x3d2   :  { %v819_v59 = vmax.f32 %v803_v34, 0.0  ;;  %v820_v60 = vmax.f32 %v804_v58, 0.0 }
 0x3d4   :  { %v828_v61 = vpack.c.bf16 %v820_v60, %v819_v59 }
 0x3d6   :  { %1368 = vmatmul.mubr.bf16.gmra.mxu0 %v824_v51 }
 0x3d7   :  { %1371 = vmatprep.mubr.bf16.mxu0 %v825_v17 }
 0x3de   :  { %1372 = vmatmul.mubr.bf16.gmra.mxu0 %v826_v57 }
 0x3df   :  { %1375 = vmatprep.mubr.bf16.mxu0 %v827_v37 }
 0x3e6   :  { %1376 = vmatmul.mubr.bf16.gmra.mxu0 %v828_v61 }
 0x48e   :  { %v1365_v63 = vpop.f32.mrf.mxu0 }
 0x48f   :  { %v941_v19 = vadd.f32 %v1365_v63, %v1039_v62 }
 0x490   :  { %v932_v0 = vpop.f32.mrf.mxu0 }
 0x491   :  { %997 = vst [vmem:[%s1869_s5 + $0x10] sm:$0xff] %v941_v19  ;;  %v933_v33 = vadd.f32 %v1039_v62, %v932_v0 }
 0x492   :  { %v1366_v35 = vpop.f32.mrf.mxu0 }
 0x493   :  { %995 = vst [vmem:[%s1869_s5] sm:$0xff] %v933_v33  ;;  %v944_v21 = vadd.f32 %v1366_v35, %v1039_v62 }
 0x494   :  { %v935_v24 = vpop.f32.mrf.mxu0 }
 0x495   :  { %998 = vst [vmem:[%s1869_s5 + $0x18] sm:$0xff] %v944_v21  ;;  %v936_v2 = vadd.f32 %v1039_v62, %v935_v24 }
 0x496   :  { %v1369_v27 = vpop.f32.mrf.mxu0 }
 0x497   :  { %996 = vst [vmem:[%s1869_s5 + $0x8] sm:$0xff] %v936_v2  ;;  %v957_v3 = vadd.f32 %v1369_v27, %v1039_v62 }
 0x498   :  { %v948_v4 = vpop.f32.mrf.mxu0 }
 0x499   :  { %1001 = vst [vmem:[%s1869_s5 + $0x30] sm:$0xff] %v957_v3  ;;  %v949_v5 = vadd.f32 %v1039_v62, %v948_v4 }
 0x49a   :  { %v1370_v36 = vpop.f32.mrf.mxu0 }
 0x49b   :  { %999 = vst [vmem:[%s1869_s5 + $0x20] sm:$0xff] %v949_v5  ;;  %v960_v38 = vadd.f32 %v1370_v36, %v1039_v62 }
 0x49c   :  { %v951_v12 = vpop.f32.mrf.mxu0 }
 0x49d   :  { %1002 = vst [vmem:[%s1869_s5 + $0x38] sm:$0xff] %v960_v38  ;;  %v952_v39 = vadd.f32 %v1039_v62, %v951_v12 }
 0x49e   :  { %v1373_v40 = vpop.f32.mrf.mxu0 }
 0x49f   :  { %1000 = vst [vmem:[%s1869_s5 + $0x28] sm:$0xff] %v952_v39  ;;  %v973_v41 = vadd.f32 %v1373_v40, %v1039_v62 }
 0x4a0   :  { %v964_v14 = vpop.f32.mrf.mxu0 }
 0x4a1   :  { %1005 = vst [vmem:[%s1869_s5 + $0x50] sm:$0xff] %v973_v41  ;;  %v965_v11 = vadd.f32 %v1039_v62, %v964_v14 }
 0x4a2   :  { %v1374_v8 = vpop.f32.mrf.mxu0 }
 0x4a3   :  { %1003 = vst [vmem:[%s1869_s5 + $0x40] sm:$0xff] %v965_v11  ;;  %v976_v13 = vadd.f32 %v1374_v8, %v1039_v62 }
 0x4a4   :  { %v967_v1 = vpop.f32.mrf.mxu0 }
 0x4a5   :  { %1006 = vst [vmem:[%s1869_s5 + $0x58] sm:$0xff] %v976_v13  ;;  %v968_v42 = vadd.f32 %v1039_v62, %v967_v1 }
 0x4a6   :  { %v1377_v25 = vpop.f32.mrf.mxu0 }
 0x4a7   :  { %1004 = vst [vmem:[%s1869_s5 + $0x48] sm:$0xff] %v968_v42  ;;  %v989_v7 = vadd.f32 %v1377_v25, %v1039_v62 }
 0x4a8   :  { %v980_v23 = vpop.f32.mrf.mxu0 }
 0x4a9   :  { %1009 = vst [vmem:[%s1869_s5 + $0x70] sm:$0xff] %v989_v7  ;;  %v981_v16 = vadd.f32 %v1039_v62, %v980_v23 }
 0x4aa   :  { %v1378_v9 = vpop.f32.mrf.mxu0 }
 0x4ab   :  { %1007 = vst [vmem:[%s1869_s5 + $0x60] sm:$0xff] %v981_v16  ;;  %v992_v28 = vadd.f32 %v1378_v9, %v1039_v62 }
 0x4ac   :  { %v983_v18 = vpop.f32.mrf.mxu0 }
 0x4ad   :  { %1010 = vst [vmem:[%s1869_s5 + $0x78] sm:$0xff] %v992_v28  ;;  %v984_v44 = vadd.f32 %v1039_v62, %v983_v18 }
 0x4af   :  { %1008 = vst [vmem:[%s1869_s5 + $0x68] sm:$0xff] %v984_v44 }

</bundles_post_ra>
